<compile_context>
chip_gen: v6e
topology: v6e:2x2x1
jax: 0.10.0
libtpu: 0.0.40
codegen_flags: <defaults>
</compile_context>

<pallas_src>
import functools

import jax
import jax.numpy as jnp
from jax.experimental import pallas as pl
from jax.experimental.pallas import tpu as pltpu

HIDDEN1 = 256
HIDDEN2 = 128
OUT_PAD = 128          # lane-dense padded width of the final layer
TM_MAX = 1024          # batch tile rows; sweep 1024-2048 (v6e/v7x), 256-512 on v5e
MIN_TM = 16            # bf16 LHS packs 16 rows per sublane group


def _round_up(x, m):
    return ((x + m - 1) // m) * m


def _choose_tile(B, tm_max):
    """Pick (tm, b_pad): rows per tile and padded batch size.

    Prefers (a) >= 2 grid steps when B >= 64 so v7x's two TensorCores both
    get work, and (b) a tile that divides B exactly so no wrapper-side pad
    copy (extra HBM pass) is needed.
    """
    if B < 64:
        tm = _round_up(max(B, MIN_TM), MIN_TM)
        return tm, tm
    tm = min(tm_max, _round_up(pl.cdiv(B, 2), MIN_TM))
    for cand in range(tm, MIN_TM - 1, -MIN_TM):
        if B % cand == 0:
            return cand, B
    return tm, _round_up(B, tm)


def sac_actor_kernel(x_ref, w1_ref, b1_ref, w2_ref, b2_ref, w3_ref, b3_ref,
                     o_ref):
    # Matmul operands in bf16 (MXU-native), accumulation + elementwise in f32.
    x = x_ref[...].astype(jnp.bfloat16)

    # Linear(input_dim, 256) + ReLU
    h1 = jnp.dot(x, w1_ref[...], preferred_element_type=jnp.float32)
    h1 = jnp.maximum(h1 + b1_ref[...], 0.0)

    # Linear(256, 128) + ReLU
    h2 = jnp.dot(h1.astype(jnp.bfloat16), w2_ref[...],
                 preferred_element_type=jnp.float32)
    h2 = jnp.maximum(h2 + b2_ref[...], 0.0)

    # Linear(128, 128-padded).  Padded bias lanes hold -1e30 so they vanish
    # in the softmax; reductions run unmasked over the full 128 lanes.
    logits = jnp.dot(h2.astype(jnp.bfloat16), w3_ref[...],
                     preferred_element_type=jnp.float32)
    logits = logits + b3_ref[...]

    # Numerically stable softmax.  Exact f32 inverse of the (tm,1)
    # denominator so probabilities sum to 1 to f32 precision.
    m = jnp.max(logits, axis=-1, keepdims=True)
    e = jnp.exp(logits - m)
    s = jnp.sum(e, axis=-1, keepdims=True)
    inv = 1.0 / s
    o_ref[...] = (e * inv).astype(o_ref.dtype)


def init_simple_sac_params(key, input_dim, action_dim=3):
    """Deterministic init mimicking PyTorch's default Linear init
    (uniform in [-1/sqrt(fan_in), 1/sqrt(fan_in)]). Weights are (in, out)."""
    def linear(key, fan_in, fan_out):
        kw, kb = jax.random.split(key)
        bound = 1.0 / jnp.sqrt(jnp.float32(fan_in))
        w = jax.random.uniform(kw, (fan_in, fan_out), jnp.float32,
                               minval=-bound, maxval=bound)
        b = jax.random.uniform(kb, (1, fan_out), jnp.float32,
                               minval=-bound, maxval=bound)
        return w, b

    k1, k2, k3 = jax.random.split(key, 3)
    w1, b1 = linear(k1, input_dim, HIDDEN1)
    w2, b2 = linear(k2, HIDDEN1, HIDDEN2)
    w3, b3 = linear(k3, HIDDEN2, action_dim)
    return {"w1": w1, "b1": b1, "w2": w2, "b2": b2, "w3": w3, "b3": b3}


def prepare_sac_params(params):
    """One-time transform: cast weights to bf16, pad the last layer to a
    lane-dense 128 columns (pad bias = -1e30 so padded lanes softmax to 0)."""
    action_dim = params["w3"].shape[1]
    pad = OUT_PAD - action_dim
    w3p = jnp.pad(params["w3"], ((0, 0), (0, pad)))
    b3p = jnp.pad(params["b3"], ((0, 0), (0, pad)), constant_values=-1e30)
    return {
        "w1": params["w1"].astype(jnp.bfloat16),
        "b1": params["b1"].astype(jnp.float32),
        "w2": params["w2"].astype(jnp.bfloat16),
        "b2": params["b2"].astype(jnp.float32),
        "w3": w3p.astype(jnp.bfloat16),
        "b3": b3p.astype(jnp.float32),
    }


@functools.partial(jax.jit, static_argnames=("tm_max",))
def simple_sac_forward_padded(state, prepared, tm_max=TM_MAX):
    """Hot-path entry point.

    state: (B, input_dim) f32.  Returns (b_pad, 128) bf16 probabilities:
    lanes >= action_dim are exactly 0, rows >= B (if any) are don't-care.
    Consumers should slice lazily / fold their reduction (argmax, sampling,
    log-prob) onto this padded block instead of materializing a slice.
    """
    B, input_dim = state.shape
    tm, b_pad = _choose_tile(B, tm_max)
    if b_pad != B:
        # Only taken when no 16-multiple tile divides B.
        # TODO(synk): a ragged last tile would avoid this extra HBM pass.
        state = jnp.pad(state, ((0, b_pad - B), (0, 0)))
    grid = (b_pad // tm,)

    flops = 2 * b_pad * (input_dim * HIDDEN1 + HIDDEN1 * HIDDEN2
                         + HIDDEN2 * OUT_PAD)
    transcendentals = b_pad * (OUT_PAD + 1)          # exp + divide
    bytes_accessed = (
        b_pad * input_dim * 4                         # state (f32)
        + (input_dim * HIDDEN1 + HIDDEN1 * HIDDEN2
           + HIDDEN2 * OUT_PAD) * 2                   # bf16 weights
        + (HIDDEN1 + HIDDEN2 + OUT_PAD) * 4           # f32 biases
        + b_pad * OUT_PAD * 2                         # output (bf16)
    )

    out = pl.pallas_call(
        sac_actor_kernel,
        out_shape=jax.ShapeDtypeStruct((b_pad, OUT_PAD), jnp.bfloat16),
        grid=grid,
        in_specs=[
            pl.BlockSpec((tm, input_dim), lambda i: (i, 0)),      # state tile
            pl.BlockSpec((input_dim, HIDDEN1), lambda i: (0, 0)), # w1 resident
            pl.BlockSpec((1, HIDDEN1), lambda i: (0, 0)),         # b1
            pl.BlockSpec((HIDDEN1, HIDDEN2), lambda i: (0, 0)),   # w2
            pl.BlockSpec((1, HIDDEN2), lambda i: (0, 0)),         # b2
            pl.BlockSpec((HIDDEN2, OUT_PAD), lambda i: (0, 0)),   # w3 (padded)
            pl.BlockSpec((1, OUT_PAD), lambda i: (0, 0)),         # b3 (padded)
        ],
        out_specs=pl.BlockSpec((tm, OUT_PAD), lambda i: (i, 0)),
        compiler_params=pltpu.CompilerParams(
            dimension_semantics=("parallel",)),
        cost_estimate=pl.CostEstimate(
            flops=flops,
            transcendentals=transcendentals,
            bytes_accessed=bytes_accessed),
    )(state,
      prepared["w1"], prepared["b1"],
      prepared["w2"], prepared["b2"],
      prepared["w3"], prepared["b3"])

    return out


def simple_sac_forward(state, prepared, action_dim):
    """Module-equivalent API: (B, action_dim) f32 probabilities.

    NOTE: the slice/cast below is an extra HBM copy; in a training loop
    consume the padded output of simple_sac_forward_padded directly.
    """
    out = simple_sac_forward_padded(state, prepared)
    return out[:state.shape[0], :action_dim].astype(jnp.float32)


if __name__ == "__main__":
    key = jax.random.PRNGKey(0)
    k_params, k_state = jax.random.split(key)

    batch = 8
    input_dim = 32
    action_dim = 3

    params = init_simple_sac_params(k_params, input_dim, action_dim)
    prepared = prepare_sac_params(params)
    state = jax.random.normal(k_state, (batch, input_dim), jnp.float32)

    probs = simple_sac_forward(state, prepared, action_dim)
    probs = jax.block_until_ready(probs)

    # Pure-JAX f32 reference of the same forward pass (PyTorch semantics).
    def ref(x, p):
        h1 = jnp.maximum(x @ p["w1"] + p["b1"], 0.0)
        h2 = jnp.maximum(h1 @ p["w2"] + p["b2"], 0.0)
        return jax.nn.softmax(h2 @ p["w3"] + p["b3"], axis=-1)

    expected = ref(state, params)
    assert probs.shape == (batch, action_dim)
    # bf16 matmul operands + bf16 output => modest tolerance vs. f32 ref.
    assert jnp.allclose(probs, expected, atol=2e-2, rtol=2e-2)
    # Normalization is exact in f32 inside the kernel; the only residual is
    # bf16 output quantization of the sliced lanes.
    assert jnp.allclose(jnp.sum(probs, axis=-1), 1.0, atol=1e-2)

    print("KERNEL_OK")
</pallas_src>

<mosaic_0001>
module attributes {stable_mosaic.version = 11 : i64} {
  func.func @sac_actor_kernel(%arg0: i32, %arg1: memref<16x32xf32, #tpu.memory_space<vmem>>, %arg2: memref<32x256xbf16, #tpu.memory_space<vmem>>, %arg3: memref<1x256xf32, #tpu.memory_space<vmem>>, %arg4: memref<256x128xbf16, #tpu.memory_space<vmem>>, %arg5: memref<1x128xf32, #tpu.memory_space<vmem>>, %arg6: memref<128x128xbf16, #tpu.memory_space<vmem>>, %arg7: memref<1x128xf32, #tpu.memory_space<vmem>>, %arg8: memref<16x128xbf16, #tpu.memory_space<vmem>>) attributes {dimension_semantics = [#tpu.dimension_semantics<parallel>], iteration_bounds = array<i64: 1>, scalar_prefetch = 0 : i64, scratch_operands = 0 : i64, tpu.core_type = #tpu.core_type<tc>, window_params = [{transform_indices = @transform_0, window_bounds = array<i64: 16, 32>}, {pipeline_mode = #tpu.pipeline_mode<synchronous>, transform_indices = @transform_1, window_bounds = array<i64: 32, 256>}, {pipeline_mode = #tpu.pipeline_mode<synchronous>, transform_indices = @transform_2, window_bounds = array<i64: 1, 256>}, {pipeline_mode = #tpu.pipeline_mode<synchronous>, transform_indices = @transform_3, window_bounds = array<i64: 256, 128>}, {pipeline_mode = #tpu.pipeline_mode<synchronous>, transform_indices = @transform_4, window_bounds = array<i64: 1, 128>}, {pipeline_mode = #tpu.pipeline_mode<synchronous>, transform_indices = @transform_5, window_bounds = array<i64: 128, 128>}, {pipeline_mode = #tpu.pipeline_mode<synchronous>, transform_indices = @transform_6, window_bounds = array<i64: 1, 128>}, {transform_indices = @transform_7, window_bounds = array<i64: 16, 128>}]} {
    %c0 = arith.constant 0 : index
    %c0_0 = arith.constant 0 : index
    %0 = vector.load %arg1[%c0, %c0_0] : memref<16x32xf32, #tpu.memory_space<vmem>>, vector<16x32xf32>
    %1 = arith.truncf %0 : vector<16x32xf32> to vector<16x32xbf16>
    %c0_1 = arith.constant 0 : index
    %c0_2 = arith.constant 0 : index
    %2 = vector.load %arg2[%c0_1, %c0_2] : memref<32x256xbf16, #tpu.memory_space<vmem>>, vector<32x256xbf16>
    %cst = arith.constant dense<0.000000e+00> : vector<16x256xf32>
    %3 = tpu.matmul %1, %2, %cst {dimension_numbers = #tpu.dot_dimension_numbers<[1], [0], [0], [1], [0, 0, 1, 1], [], []>} : vector<16x32xbf16>, vector<32x256xbf16>, vector<16x256xf32> -> vector<16x256xf32>
    %c0_3 = arith.constant 0 : index
    %c0_4 = arith.constant 0 : index
    %4 = vector.load %arg3[%c0_3, %c0_4] : memref<1x256xf32, #tpu.memory_space<vmem>>, vector<1x256xf32>
    %5 = vector.broadcast %4 : vector<1x256xf32> to vector<16x256xf32>
    %6 = arith.addf %3, %5 : vector<16x256xf32>
    %cst_5 = arith.constant 0.000000e+00 : f32
    %7 = vector.broadcast %cst_5 : f32 to vector<16x256xf32>
    %8 = arith.maximumf %6, %7 : vector<16x256xf32>
    %9 = arith.truncf %8 : vector<16x256xf32> to vector<16x256xbf16>
    %c0_6 = arith.constant 0 : index
    %c0_7 = arith.constant 0 : index
    %10 = vector.load %arg4[%c0_6, %c0_7] : memref<256x128xbf16, #tpu.memory_space<vmem>>, vector<256x128xbf16>
    %cst_8 = arith.constant dense<0.000000e+00> : vector<16x128xf32>
    %11 = tpu.matmul %9, %10, %cst_8 {dimension_numbers = #tpu.dot_dimension_numbers<[1], [0], [0], [1], [0, 0, 1, 1], [], []>} : vector<16x256xbf16>, vector<256x128xbf16>, vector<16x128xf32> -> vector<16x128xf32>
    %c0_9 = arith.constant 0 : index
    %c0_10 = arith.constant 0 : index
    %12 = vector.load %arg5[%c0_9, %c0_10] : memref<1x128xf32, #tpu.memory_space<vmem>>, vector<1x128xf32>
    %13 = vector.broadcast %12 : vector<1x128xf32> to vector<16x128xf32>
    %14 = arith.addf %11, %13 : vector<16x128xf32>
    %cst_11 = arith.constant 0.000000e+00 : f32
    %15 = vector.broadcast %cst_11 : f32 to vector<16x128xf32>
    %16 = arith.maximumf %14, %15 : vector<16x128xf32>
    %17 = arith.truncf %16 : vector<16x128xf32> to vector<16x128xbf16>
    %c0_12 = arith.constant 0 : index
    %c0_13 = arith.constant 0 : index
    %18 = vector.load %arg6[%c0_12, %c0_13] : memref<128x128xbf16, #tpu.memory_space<vmem>>, vector<128x128xbf16>
    %cst_14 = arith.constant dense<0.000000e+00> : vector<16x128xf32>
    %19 = tpu.matmul %17, %18, %cst_14 {dimension_numbers = #tpu.dot_dimension_numbers<[1], [0], [0], [1], [0, 0, 1, 1], [], []>} : vector<16x128xbf16>, vector<128x128xbf16>, vector<16x128xf32> -> vector<16x128xf32>
    %c0_15 = arith.constant 0 : index
    %c0_16 = arith.constant 0 : index
    %20 = vector.load %arg7[%c0_15, %c0_16] : memref<1x128xf32, #tpu.memory_space<vmem>>, vector<1x128xf32>
    %21 = vector.broadcast %20 : vector<1x128xf32> to vector<16x128xf32>
    %22 = arith.addf %19, %21 : vector<16x128xf32>
    %cst_17 = arith.constant dense<0xFF800000> : vector<16xf32>
    %23 = vector.multi_reduction <maximumf>, %22, %cst_17 [1] : vector<16x128xf32> to vector<16xf32>
    %24 = vector.shape_cast %23 : vector<16xf32> to vector<16x1xf32>
    %25 = vector.broadcast %24 : vector<16x1xf32> to vector<16x128xf32>
    %26 = arith.subf %22, %25 : vector<16x128xf32>
    %27 = math.exp %26 : vector<16x128xf32>
    %cst_18 = arith.constant dense<0.000000e+00> : vector<16xf32>
    %28 = vector.multi_reduction <add>, %27, %cst_18 [1] : vector<16x128xf32> to vector<16xf32>
    %29 = vector.shape_cast %28 : vector<16xf32> to vector<16x1xf32>
    %cst_19 = arith.constant 1.000000e+00 : f32
    %30 = vector.broadcast %cst_19 : f32 to vector<16x1xf32>
    %31 = arith.divf %30, %29 : vector<16x1xf32>
    %32 = vector.broadcast %31 : vector<16x1xf32> to vector<16x128xf32>
    %33 = arith.mulf %27, %32 : vector<16x128xf32>
    %34 = arith.truncf %33 : vector<16x128xf32> to vector<16x128xbf16>
    %c0_20 = arith.constant 0 : index
    %c0_21 = arith.constant 0 : index
    %35 = vector.load %arg8[%c0_20, %c0_21] : memref<16x128xbf16, #tpu.memory_space<vmem>>, vector<16x128xbf16>
    tpu.vector_store %arg8[%c0_20, %c0_21], %34 {strides = array<i32>} : memref<16x128xbf16, #tpu.memory_space<vmem>>, vector<16x128xbf16>,
    return
  }
  func.func @transform_0(%arg0: i32) -> (i32, i32) {
    %c0_i32 = arith.constant 0 : i32
    %c0_i32_0 = arith.constant 0 : i32
    return %arg0, %c0_i32 : i32, i32
  }
  func.func @transform_1(%arg0: i32) -> (i32, i32) {
    %c0_i32 = arith.constant 0 : i32
    %c0_i32_0 = arith.constant 0 : i32
    %c0_i32_1 = arith.constant 0 : i32
    return %c0_i32, %c0_i32_0 : i32, i32
  }
  func.func @transform_2(%arg0: i32) -> (i32, i32) {
    %c0_i32 = arith.constant 0 : i32
    %c0_i32_0 = arith.constant 0 : i32
    %c0_i32_1 = arith.constant 0 : i32
    return %c0_i32, %c0_i32_0 : i32, i32
  }
  func.func @transform_3(%arg0: i32) -> (i32, i32) {
    %c0_i32 = arith.constant 0 : i32
    %c0_i32_0 = arith.constant 0 : i32
    %c0_i32_1 = arith.constant 0 : i32
    return %c0_i32, %c0_i32_0 : i32, i32
  }
  func.func @transform_4(%arg0: i32) -> (i32, i32) {
    %c0_i32 = arith.constant 0 : i32
    %c0_i32_0 = arith.constant 0 : i32
    %c0_i32_1 = arith.constant 0 : i32
    return %c0_i32, %c0_i32_0 : i32, i32
  }
  func.func @transform_5(%arg0: i32) -> (i32, i32) {
    %c0_i32 = arith.constant 0 : i32
    %c0_i32_0 = arith.constant 0 : i32
    %c0_i32_1 = arith.constant 0 : i32
    return %c0_i32, %c0_i32_0 : i32, i32
  }
  func.func @transform_6(%arg0: i32) -> (i32, i32) {
    %c0_i32 = arith.constant 0 : i32
    %c0_i32_0 = arith.constant 0 : i32
    %c0_i32_1 = arith.constant 0 : i32
    return %c0_i32, %c0_i32_0 : i32, i32
  }
  func.func @transform_7(%arg0: i32) -> (i32, i32) {
    %c0_i32 = arith.constant 0 : i32
    %c0_i32_0 = arith.constant 0 : i32
    return %arg0, %c0_i32 : i32, i32
  }
}

</mosaic_0001>

<bundles_post_ra>
// kernel: simple_sac_forward_padded.1
= control target key start
LH: loop header
LB: loop body
LE: loop exit
PB: predicated region body
PF: predicated region fallthrough
CT: control target
= control target key end

     0   :  { %12 = vsyncpa [#allocation3], 0  ;;  %s886_s0 = inlined_call_operand.vmem [shape: f32[16,32], index: 0, kind: input, shape index: {}]   ;;  %s887_s1 = inlined_call_operand.vmem [shape: bf16[32,256], index: 1, kind: input, shape index: {}]   ;;  %s888_s2 = inlined_call_operand.hbm [shape: f32[1,256], index: 2, kind: input, shape index: {}]   ;;  %s889_s3 = inlined_call_operand.hbm [shape: bf16[256,128], index: 3, kind: input, shape index: {}]   ;;  %s890_s4 = inlined_call_operand.hbm [shape: f32[1,128], index: 4, kind: input, shape index: {}]   ;;  %s891_s5 = inlined_call_operand.hbm [shape: bf16[128,128], index: 5, kind: input, shape index: {}]   ;;  %s892_s6 = inlined_call_operand.hbm [shape: f32[1,128], index: 6, kind: input, shape index: {}]   ;;  %s893_s7 = inlined_call_operand.hbm [shape: bf16[16,128], index: 7, kind: output, shape index: {}]  }
   0x1   :  { %13 = vsyncpa [#allocation6], 0 }
   0x2   :  { %14 = vsyncpa [#allocation9], 0 }
   0x3   :  { %15 = vsyncpa [#allocation4], 0  ;;  %s790_s24 = smov [#allocation5]  }
   0x4   :  { %s35_s25 = sshll.u32 %s790_s24, 4  ;;  %s36_s25 = int_to_ptr.vmem [resolvable:$true] %s35_s25 }
   0x5   :  { %s670_s26 = scalar_lea.vmem %s36_s25, 2048  ;;  %p675_p1 = scmp.lt.s32.totalorder %s36_s25, %s36_s25 }
   0x6   :  { %p671_p0 = scmp.ne.s32.totalorder %s36_s25, %s670_s26  ;;  %p676_p2 = scmp.lt.s32.totalorder %s670_s26, %s670_s26 }
   0x8   :  { %p677_p3 = por %p676_p2, %p675_p1 }
   0xa   :  { %p678_p4 = pnand %p677_p3, %p671_p0 }
   0xc   :  { %681 = shalt.err (!%p678_p4)
}
   0xd   :  { %s791_s27 = smov 64   ;;  %s792_s28 = smov 4  }
   0xe   :  { %41 = dma.hbm_to_vmem [thread:$0]  %s889_s3, 2048, %s36_s25, [#allocation6], %s791_s27, %s791_s27, %s792_s28  }
   0xf   :  { %s793_s8 = smov [#allocation8]   ;;  %s794_s10 = smov [#allocation2]  }
  0x10   :  { %s57_s9 = sshll.u32 %s793_s8, 4  ;;  %s26_s11 = sshll.u32 %s794_s10, 4  ;;  %s58_s9 = int_to_ptr.vmem [resolvable:$true] %s57_s9  ;;  %s27_s11 = int_to_ptr.vmem [resolvable:$true] %s26_s11 }
  0x11   :  { %s690_s12 = scalar_lea.vmem %s58_s9, 1024  ;;  %p695_p6 = scmp.lt.s32.totalorder %s58_s9, %s58_s9 }
  0x12   :  { %p691_p5 = scmp.ne.s32.totalorder %s58_s9, %s690_s12  ;;  %p696_p7 = scmp.lt.s32.totalorder %s690_s12, %s690_s12 }
  0x14   :  { %p697_p8 = por %p696_p7, %p695_p6 }
  0x16   :  { %p698_p9 = pnand %p697_p8, %p691_p5 }
  0x18   :  { %701 = shalt.err (!%p698_p9)
}
  0x19   :  { %63 = dma.hbm_to_vmem [thread:$0]  %s891_s5, 1024, %s58_s9, [#allocation9], %s791_s27, %s791_s27, %s792_s28  }
  0x1a   :  { %s710_s3 = scalar_lea.vmem %s27_s11, 32  ;;  %p715_p11 = scmp.lt.s32.totalorder %s27_s11, %s27_s11 }
  0x1b   :  { %p711_p10 = scmp.ne.s32.totalorder %s27_s11, %s710_s3  ;;  %p716_p12 = scmp.lt.s32.totalorder %s710_s3, %s710_s3 }
  0x1d   :  { %p717_p13 = por %p716_p12, %p715_p11 }
  0x1f   :  { %p718_p0 = pnand %p717_p13, %p711_p10 }
  0x21   :  { %721 = shalt.err (!%p718_p0)
}
  0x22   :  { %29 = dma.hbm_to_vmem [thread:$0]  %s888_s2, 32, %s27_s11, [#allocation3]  }
  0x23   :  { %s795_s17 = smov [#allocation7]   ;;  %s796_s19 = smov [#allocation10]  }
  0x24   :  { %s48_s18 = sshll.u32 %s795_s17, 4  ;;  %s70_s20 = sshll.u32 %s796_s19, 4  ;;  %s49_s18 = int_to_ptr.vmem [resolvable:$true] %s48_s18  ;;  %s71_s20 = int_to_ptr.vmem [resolvable:$true] %s70_s20 }
  0x25   :  { %s730_s21 = scalar_lea.vmem %s49_s18, 16  ;;  %s734_s5 = scalar_lea.vmem %s49_s18, 32 }
  0x26   :  { %p731_p1 = scmp.ne.s32.totalorder %s49_s18, %s730_s21  ;;  %p735_p2 = scmp.lt.s32.totalorder %s49_s18, %s49_s18 }
  0x27   :  { %p736_p3 = scmp.lt.s32.totalorder %s734_s5, %s730_s21 }
  0x29   :  { %p737_p4 = por %p736_p3, %p735_p2 }
  0x2b   :  { %p738_p5 = pnand %p737_p4, %p731_p1 }
  0x2d   :  { %741 = shalt.err (!%p738_p5)
}
  0x2e   :  { %51 = dma.hbm_to_vmem [thread:$0]  %s890_s4, 16, %s49_s18, [#allocation6]  }
  0x2f   :  { %s750_s24 = scalar_lea.vmem %s71_s20, 16  ;;  %s754_s2 = scalar_lea.vmem %s71_s20, 32 }
  0x30   :  { %p751_p6 = scmp.ne.s32.totalorder %s71_s20, %s750_s24  ;;  %p755_p7 = scmp.lt.s32.totalorder %s71_s20, %s71_s20 }
  0x31   :  { %p756_p8 = scmp.lt.s32.totalorder %s754_s2, %s750_s24 }
  0x33   :  { %p757_p9 = por %p756_p8, %p755_p7 }
  0x35   :  { %p758_p10 = pnand %p757_p9, %p751_p6 }
  0x37   :  { %761 = shalt.err (!%p758_p10)
}
  0x38   :  { %73 = dma.hbm_to_vmem [thread:$0]  %s892_s6, 16, %s71_s20, [#allocation9]  }
  0x39   :  { %782 = dma.done.wait [#allocation3], 32  }
  0x3a   :  { %783 = vsyncadd [#allocation3], 4294967264 }
  0x3b   :  { %784 = dma.done.wait [#allocation6], 2064  }
  0x3c   :  { %785 = vsyncadd [#allocation6], 4294965232 }
  0x3d   :  { %786 = dma.done.wait [#allocation9], 1040  }
  0x3e   :  { %787 = vsyncadd [#allocation9], 4294966256  ;;  %v797_v0 = vmov 0   ;;  %v624_v1 = vld [vmem:[%s887_s1 + $0x14] ss:$8 sps:$4 sm:$0xff]   ;;  %v90_v5 = vld [vmem:[%s886_s0] sm:$0xff]  ;;  %v99_v29 = vlaneseq }
  0x3f   :  { %165 = vmatprep.mubr.bf16.mxu0 %v797_v0  ;;  %v626_v2 = vld [vmem:[%s887_s1 + $0x10] ss:$8 sps:$4 sm:$0xff]   ;;  %145 = vmatprep.subr.bf16.mxu0 %v624_v1  ;;  %v627_v3 = vld [vmem:[%s887_s1 + $0x4] ss:$8 sps:$4 sm:$0xff]   ;;  %v629_v4 = vld [vmem:[%s887_s1] ss:$8 sps:$4 sm:$0xff]  }
  0x40   :  { %146 = vmatpush1.bf16.msra.mxu0 %v626_v2  ;;  %v91_v6 = vld [vmem:[%s886_s0 + $0x8] sm:$0xff]  ;;  %v630_v7 = vld [vmem:[#allocation5 + $0x78] sm:$0xff]   ;;  %v632_v10 = vld [vmem:[#allocation5 + $0x70] sm:$0xff]   ;;  %vm129_vm0 = vcmask 261120   ;;  %v798_v25 = vmov 0.0   ;;  %v100_v30 = vshrl.u32 %v99_v29, 7 }
  0x41   :  { %147 = vmatprep.subr.bf16.mxu0 %v627_v3  ;;  %v631_v8 = vld [vmem:[#allocation5 + $0x38] sm:$0xff]   ;;  %v92_v9 = vpack.c.bf16 %v91_v6, %v90_v5  ;;  %562 = vmatprep.subr.bf16.mxu1 %v630_v7  ;;  %v633_v11 = vld [vmem:[#allocation5 + $0x30] sm:$0xff]   ;;  %v634_v12 = vld [vmem:[#allocation5 + $0x68] sm:$0xff]   ;;  %vm799_vm1 = vmmov 0   ;;  %s800_s0 = smov [#allocation11]  }
  0x42   :  { %563 = vmatpush3.bf16.msra.mxu1 %v631_v8  ;;  %v635_v13 = vld [vmem:[#allocation5 + $0x28] sm:$0xff]   ;;  %v636_v14 = vld [vmem:[#allocation5 + $0x60] sm:$0xff]   ;;  %v638_v16 = vld [vmem:[#allocation5 + $0x58] sm:$0xff]   ;;  %v105_v31 = vsub.s32 1, %v100_v30  ;;  %v101_v32 = vsub.s32 0, %v100_v30  ;;  %s508_s1 = sshll.u32 %s800_s0, 4  ;;  %s509_s1 = int_to_ptr.vmem [resolvable:$true] %s508_s1 }
  0x43   :  { %564 = vmatprep.subr.bf16.mxu1 %v632_v10  ;;  %v637_v15 = vld [vmem:[#allocation5 + $0x20] sm:$0xff]   ;;  %v639_v17 = vld [vmem:[#allocation5 + $0x18] sm:$0xff]   ;;  %v640_v18 = vld [vmem:[#allocation5 + $0x50] sm:$0xff]   ;;  %s762_s15 = scalar_lea.vmem %s509_s1, 128  ;;  %p767_p12 = scmp.lt.s32.totalorder %s509_s1, %s509_s1 }
  0x44   :  { %148 = vmatpush1.bf16.msra.mxu0 %v629_v4  ;;  %v641_v19 = vld [vmem:[#allocation5 + $0x10] sm:$0xff]   ;;  %v642_v20 = vld [vmem:[#allocation5 + $0x48] sm:$0xff]   ;;  %v644_v22 = vld [vmem:[#allocation5 + $0x40] sm:$0xff]   ;;  %p763_p11 = scmp.ne.s32.totalorder %s509_s1, %s762_s15  ;;  %p768_p13 = scmp.lt.s32.totalorder %s762_s15, %s762_s15 }
  0x45   :  { %v643_v21 = vld [vmem:[#allocation5 + $0x8] sm:$0xff]   ;;  %v645_v23 = vld [vmem:[#allocation5] sm:$0xff]   ;;  %593 = vmatprep.subr.bf16.mxu0 %v798_v25  ;;  %v647_v26 = vld [vmem:[#allocation8 + $0x30] sm:$0xff]  }
  0x46   :  { %565 = vmatpush3.bf16.msra.mxu1 %v633_v11  ;;  %v646_v24 = vld [vmem:[#allocation8 + $0x38] sm:$0xff]   ;;  %v648_v27 = vld [vmem:[#allocation8 + $0x28] sm:$0xff]   ;;  %v649_v28 = vld [vmem:[#allocation8 + $0x20] sm:$0xff]   ;;  %p769_p0 = por %p768_p13, %p767_p12 }
  0x47   :  { %526 = vmatmul.mubr.msk.bf16.vlgmr.msra.gmra.mxu0 %vm129_vm0, %v92_v9  ;;  %566 = vmatprep.subr.bf16.mxu1 %v634_v12  ;;  %v97_v33 = vld [vmem:[#allocation2] sm:$0x3]  ;;  %v651_v51 = vld [vmem:[#allocation8 + $0x10] sm:$0xff]   ;;  %v652_v52 = vld [vmem:[#allocation8 + $0x8] sm:$0xff]  }
  0x48   :  { %594 = vmatpush3.bf16.msra.mxu0 %v646_v24  ;;  %v106_v35 = vrot.slane %v97_v33, %v105_v31  ;;  %v102_v36 = vrot.slane %v97_v33, %v101_v32  ;;  %v650_v50 = vld [vmem:[#allocation8 + $0x18] sm:$0xff]   ;;  %v653_v53 = vld [vmem:[#allocation8] sm:$0xff]   ;;  %609 = vmatprep.mubr.msk.bf16.mxu0 %vm799_vm1, %v798_v25  ;;  %p770_p1 = pnand %p769_p0, %p763_p11 }
  0x49   :  { %595 = vmatprep.subr.bf16.mxu0 %v798_v25  ;;  %v527_v57 = vld [vmem:[#allocation7] ss:$0 sm:$0xff]  ;;  %v544_v2 = vld [vmem:[#allocation10] ss:$0 sm:$0xff] }
  0x4a   :  { %567 = vmatpush3.bf16.msra.mxu1 %v635_v13 }
  0x4b   :  { %568 = vmatprep.subr.bf16.mxu1 %v636_v14 }
  0x4c   :  { %596 = vmatpush3.bf16.msra.mxu0 %v647_v26 }
  0x4d   :  { %597 = vmatprep.subr.bf16.mxu0 %v798_v25 }
  0x4e   :  { %569 = vmatpush3.bf16.msra.mxu1 %v637_v15 }
  0x4f   :  { %570 = vmatprep.subr.bf16.mxu1 %v638_v16 }
  0x50   :  { %598 = vmatpush3.bf16.msra.mxu0 %v648_v27 }
  0x51   :  { %599 = vmatprep.subr.bf16.mxu0 %v798_v25 }
  0x52   :  { %571 = vmatpush3.bf16.msra.mxu1 %v639_v17 }
  0x53   :  { %572 = vmatprep.subr.bf16.mxu1 %v640_v18 }
  0x54   :  { %600 = vmatpush3.bf16.msra.mxu0 %v649_v28 }
  0x55   :  { %601 = vmatprep.subr.bf16.mxu0 %v798_v25 }
  0x56   :  { %573 = vmatpush3.bf16.msra.mxu1 %v641_v19 }
  0x57   :  { %574 = vmatprep.subr.bf16.mxu1 %v642_v20 }
  0x58   :  { %602 = vmatpush3.bf16.msra.mxu0 %v650_v50 }
  0x59   :  { %603 = vmatprep.subr.bf16.mxu0 %v798_v25 }
  0x5a   :  { %575 = vmatpush3.bf16.msra.mxu1 %v643_v21 }
  0x5b   :  { %576 = vmatprep.subr.bf16.mxu1 %v644_v22 }
  0x5c   :  { %604 = vmatpush3.bf16.msra.mxu0 %v651_v51 }
  0x5d   :  { %605 = vmatprep.subr.bf16.mxu0 %v798_v25 }
  0x5e   :  { %577 = vmatpush3.bf16.msra.mxu1 %v645_v23 }
  0x60   :  { %606 = vmatpush3.bf16.msra.mxu0 %v652_v52 }
  0x61   :  { %607 = vmatprep.subr.bf16.mxu0 %v798_v25 }
  0x64   :  { %608 = vmatpush3.bf16.msra.mxu0 %v653_v53 }
 0x107   :  { %v167_v34 = vpop.f32.mrf.mxu0 }
 0x108   :  { %v168_v41 = vadd.f32 %v167_v34, %v102_v36 }
 0x109   :  { %v169_v37 = vpop.f32.mrf.mxu0 }
 0x10a   :  { %v170_v39 = vadd.f32 %v169_v37, %v106_v35  ;;  %v176_v47 = vmax.f32 %v168_v41, 0.0 }
 0x10b   :  { %v171_v38 = vpop.f32.mrf.mxu0 }
 0x10c   :  { %v172_v40 = vadd.f32 %v171_v38, %v102_v36  ;;  %v177_v45 = vmax.f32 %v170_v39, 0.0 }
 0x10d   :  { %v173_v42 = vpop.f32.mrf.mxu0 }
 0x10e   :  { %v174_v43 = vadd.f32 %v173_v42, %v106_v35  ;;  %v178_v44 = vmax.f32 %v172_v40, 0.0 }
 0x110   :  { %v179_v46 = vmax.f32 %v174_v43, 0.0  ;;  %v180_v49 = vpack.c.bf16 %v178_v44, %v176_v47 }
 0x112   :  { %v181_v48 = vpack.c.bf16 %v179_v46, %v177_v45 }
 0x114   :  { %349 = vmatprep.mubr.bf16.mxu1 %v181_v48 }
 0x115   :  { %350 = vmatmul.mubr.bf16.vlgmr.msra.gmra.mxu1 %v180_v49 }
 0x1d5   :  { %v578_v54 = vpop.f32.mrf.mxu1 }
 0x1d7   :  { %v579_v55 = vpop.f32.mrf.mxu1 }
 0x1d8   :  { %v580_v56 = vadd.f32 %v579_v55, %v578_v54 }
 0x1d9   :  { %v581_v58 = vpop.f32.mrf.mxu1 }
 0x1da   :  { %v352_v60 = vadd.f32 %v580_v56, %v527_v57 }
 0x1db   :  { %v582_v59 = vpop.f32.mrf.mxu1 }
 0x1dc   :  { %v583_v61 = vadd.f32 %v582_v59, %v581_v58  ;;  %v358_v63 = vmax.f32 %v352_v60, 0.0 }
 0x1de   :  { %v355_v62 = vadd.f32 %v583_v61, %v527_v57 }
 0x1e0   :  { %v359_v0 = vmax.f32 %v355_v62, 0.0 }
 0x1e2   :  { %v360_v1 = vpack.c.bf16 %v359_v0, %v358_v63 }
 0x1e4   :  { %610 = vmatmul.mubr.bf16.vlgmr.msra.gmra.mxu0 %v360_v1 }
 0x2a4   :  { %v466_v3 = vpop.f32.mrf.mxu0 }
 0x2a5   :  { %v467_v4 = vadd.f32 %v544_v2, %v466_v3 }
 0x2a6   :  { %v611_v5 = vpop.f32.mrf.mxu0 }
 0x2a7   :  { %473 = vmax.xlane.f32.xlu0 %v467_v4 }
 0x2a8   :  { %v469_v6 = vpop.f32.mrf.mxu0 }
 0x2a9   :  { %v470_v7 = vadd.f32 %v544_v2, %v469_v6 }
 0x2aa   :  { %v612_v8 = vpop.f32.mrf.mxu0 }
 0x2ab   :  { %475 = vmax.xlane.f32.xlu0 %v470_v7 }
 0x330   :  { %v474_v9 = vpop.xlane.xlu0 %473 }
 0x331   :  { %v477_v10 = vsub.f32 %v467_v4, %v474_v9 }
 0x333   :  { %v479_v11 = vmul.f32 1.442695, %v477_v10 }
 0x334   :  { %v476_v12 = vpop.xlane.xlu0 %475 }
 0x335   :  { %654 = vpow2.f32 %v479_v11  ;;  %v478_v13 = vsub.f32 %v470_v7, %v476_v12 }
 0x337   :  { %v481_v14 = vmul.f32 1.442695, %v478_v13 }
 0x339   :  { %656 = vpow2.f32 %v481_v14 }
 0x342   :  { %v655_v15 = vpop.eup %654 }
 0x343   :  { %483 = vadd.xlane.f32.xlu1 %v655_v15 }
 0x346   :  { %v657_v16 = vpop.eup %656 }
 0x347   :  { %485 = vadd.xlane.f32.xlu1 %v657_v16 }
 0x3cc   :  { %v484_v17 = vpop.xlane.xlu1 %483 }
 0x3cd   :  { %658 = vrcp.f32 %v484_v17 }
 0x3d0   :  { %v486_v18 = vpop.xlane.xlu1 %485 }
 0x3d1   :  { %660 = vrcp.f32 %v486_v18 }
 0x3da   :  { %v659_v19 = vpop.eup %658 }
 0x3db   :  { %v491_v21 = vmul.f32 %v659_v19, %v655_v15 }
 0x3de   :  { %v661_v20 = vpop.eup %660 }
 0x3df   :  { %v492_v22 = vmul.f32 %v661_v20, %v657_v16 }
 0x3e1   :  { %v560_v23 = vpack.c.bf16 %v492_v22, %v491_v21 }
 0x3e3   :  { %561 = vst [vmem:[#allocation11] sm:$0xff] %v560_v23  }
 0x3e4   :  { %773 = shalt.err (!%p770_p1)
}
 0x3e5   :  { %514 = dma.vmem_to_hbm [thread:$0]  %s509_s1, 128, %s893_s7, [#allocation4], %s791_s27, %s791_s27, %s792_s28  }
 0x3e6   :  { %788 = dma.done.wait [#allocation4], 128  }
 0x3e7   :  { %789 = vsyncadd [#allocation4], 4294967168 }
 0x3e8   :  { %518 = vsyncpa [#allocation3], 1 }
 0x3e9   :  { %519 = vsyncpa [#allocation6], 1 }
 0x3ea   :  { %520 = vsyncpa [#allocation9], 1 }
 0x3eb   :  { %521 = vsyncpa [#allocation4], 1 }

</bundles_post_ra>
